<compile_context>
chip_gen: v7x
topology: tpu7x:2x2x1
jax: 0.10.0
libtpu: 0.0.40
codegen_flags: <defaults>
</compile_context>

<pallas_src>
import functools

import jax
import jax.numpy as jnp
import numpy as np
from jax.experimental import pallas as pl
from jax.experimental.pallas import tpu as pltpu


# ----------------------------- Pallas kernel --------------------------------

def _fused_conv_kernel(p_ref, w_ref, b_ref, *rest, relu, mode):
    """One M-tile of: act(p @ w [+ ps @ ws] + bias [+ residual]).

    Full-K resident weights -> no K grid axis, no accumulator scratch.
    Epilogue (bias / residual / ReLU) is f32.
    """
    o_ref = rest[-1]
    acc = jnp.dot(p_ref[...], w_ref[...], preferred_element_type=jnp.float32)
    if mode == "proj":                       # projection shortcut: 2nd MXU dot
        acc = acc + jnp.dot(rest[0][...], rest[1][...],
                            preferred_element_type=jnp.float32)
    acc = acc + b_ref[...]
    if mode == "residual":                   # identity shortcut: f32 add
        acc = acc + rest[0][...]
    if relu:
        acc = jnp.maximum(acc, 0.0)
    o_ref[...] = acc.astype(o_ref.dtype)


def _round_up(x, m):
    return ((x + m - 1) // m) * m


def _cdiv(a, b):
    return (a + b - 1) // b


def _pick_tm(m, per_row_bytes, resident_bytes, budget_bytes=24 << 20):
    """Largest M tile under the VMEM budget, with >= 2 blocks for v7x's 2 TCs."""
    tm = min(1024, _round_up(m, 16))
    if m > 16 and _cdiv(m, tm) < 2:
        tm = max(16, _round_up(_cdiv(m, 2), 16))   # give both TensorCores work
    while tm > 16 and resident_bytes + tm * per_row_bytes > budget_bytes:
        tm = max(16, _round_up(tm // 2, 16))
    return tm


def fused_conv_matmul(patches, w_folded, bias, *, shortcut=None, residual=None,
                      relu=True, out_dtype=jnp.float32):
    """out = act(patches @ w_folded [+ ps @ ws] + bias [+ residual]).

    patches:  (M, K) bf16 im2col matrix (BN scale already folded into w).
    w_folded: (K, N) f32, cast to bf16 here (tiny).
    bias:     (N,) / (1, N) f32 per-channel bias.
    shortcut: optional (ps (M, Ks) bf16, ws (Ks, N) f32) projection branch.
    residual: optional (M, N) f32, added in the f32 epilogue (identity branch).
    """
    m, k = patches.shape
    n = w_folded.shape[1]
    out_itemsize = jnp.dtype(out_dtype).itemsize

    kp = _round_up(k, 16)       # bf16 sublane pad only; full-K blocks are legal
    np_ = _round_up(n, 128)     # lane-dense output tiles

    ksp = 0
    if shortcut is not None:
        ps, ws = shortcut
        ksp = _round_up(ps.shape[1], 16)

    # VMEM budget: resident weights/bias (count pipelining copies) ...
    resident = 2 * (kp * np_ * 2 + ksp * np_ * 2 + np_ * 4)
    # ... plus double-buffered per-output-row streaming operands.
    per_row = 2 * (kp * 2 + ksp * 2 + np_ * out_itemsize
                   + (np_ * 4 if residual is not None else 0))
    tm = _pick_tm(m, per_row, resident)
    mp = _round_up(m, tm)

    p = jnp.pad(patches.astype(jnp.bfloat16), ((0, mp - m), (0, kp - k)))
    w = jnp.pad(w_folded, ((0, kp - k), (0, np_ - n))).astype(jnp.bfloat16)
    b = jnp.pad(jnp.asarray(bias, jnp.float32).reshape(1, -1),
                ((0, 0), (0, np_ - n)))

    inputs = [p, w, b]
    in_specs = [
        pl.BlockSpec((tm, kp), lambda i: (i, 0)),      # streamed patches
        pl.BlockSpec((kp, np_), lambda i: (0, 0)),     # VMEM-resident weights
        pl.BlockSpec((1, np_), lambda i: (0, 0)),      # VMEM-resident bias
    ]
    mode = "plain"
    flops = 2 * m * k * n                               # true (unpadded) dims
    bytes_accessed = m * k * 2 + k * n * 2 + m * n * out_itemsize + n * 4

    if shortcut is not None:
        mode = "proj"
        ks = ps.shape[1]
        ps_p = jnp.pad(ps.astype(jnp.bfloat16), ((0, mp - m), (0, ksp - ks)))
        ws_p = jnp.pad(ws, ((0, ksp - ks), (0, np_ - n))).astype(jnp.bfloat16)
        inputs += [ps_p, ws_p]
        in_specs += [pl.BlockSpec((tm, ksp), lambda i: (i, 0)),
                     pl.BlockSpec((ksp, np_), lambda i: (0, 0))]
        flops += 2 * m * ks * n
        bytes_accessed += m * ks * 2 + ks * n * 2
    elif residual is not None:
        mode = "residual"
        r = jnp.pad(residual.astype(jnp.float32), ((0, mp - m), (0, np_ - n)))
        inputs += [r]
        in_specs += [pl.BlockSpec((tm, np_), lambda i: (i, 0))]
        bytes_accessed += m * n * 4

    # Raise the scoped-VMEM limit only when the chosen tiles actually need it
    # (keeps us inside v7x's smaller 64 MiB physical VMEM too).
    est_vmem = resident + tm * per_row
    vmem_limit = None
    if est_vmem > (24 << 20):
        vmem_limit = min(int(est_vmem * 3 // 2) + (2 << 20), 60 << 20)

    out = pl.pallas_call(
        functools.partial(_fused_conv_kernel, relu=relu, mode=mode),
        out_shape=jax.ShapeDtypeStruct((mp, np_), out_dtype),
        grid_spec=pltpu.PrefetchScalarGridSpec(
            num_scalar_prefetch=0,
            grid=(mp // tm,),
            in_specs=in_specs,
            out_specs=pl.BlockSpec((tm, np_), lambda i: (i, 0)),
        ),
        compiler_params=pltpu.CompilerParams(
            dimension_semantics=("parallel",),
            vmem_limit_bytes=vmem_limit),
        cost_estimate=pl.CostEstimate(flops=flops, transcendentals=0,
                                      bytes_accessed=bytes_accessed),
    )(*inputs)
    return out[:m, :n]


# ------------------------------- JAX glue ------------------------------------

def im2col_bf16(x_nhwc, kh, kw, stride, pad):
    """Extract conv patches in bf16. Returns ((N*Ho*Wo, kh*kw*C), Ho, Wo)."""
    n, h, w, c = x_nhwc.shape
    xb = x_nhwc.astype(jnp.bfloat16)
    xp = jnp.pad(xb, ((0, 0), (pad, pad), (pad, pad), (0, 0)))
    ho = (h + 2 * pad - kh) // stride + 1
    wo = (w + 2 * pad - kw) // stride + 1
    cols = []
    for i in range(kh):
        for j in range(kw):
            cols.append(
                xp[:, i:i + (ho - 1) * stride + 1:stride,
                      j:j + (wo - 1) * stride + 1:stride, :])
    patches = jnp.concatenate(cols, axis=-1) if len(cols) > 1 else cols[0]
    return patches.reshape(n * ho * wo, kh * kw * c), ho, wo


def conv_weight_to_matrix(w_oihw):
    """(Cout, Cin, kh, kw) -> (kh*kw*Cin, Cout), matching im2col column order."""
    c_out, c_in, kh, kw = w_oihw.shape
    return jnp.transpose(w_oihw, (2, 3, 1, 0)).reshape(kh * kw * c_in, c_out)


def fold_bn(gamma, beta, mean, var, eps=1e-5):
    scale = gamma / jnp.sqrt(var + eps)
    bias = beta - mean * scale
    return scale.reshape(1, -1), bias.reshape(1, -1)


def init_resblock_params(key, in_ch, out_ch, stride):
    ks = jax.random.split(key, 20)
    p = {}
    p["w1"] = 0.1 * jax.random.normal(ks[0], (out_ch, in_ch, 3, 3), jnp.float32)
    p["bn1"] = (0.5 + jax.random.uniform(ks[1], (out_ch,)),      # gamma
                0.1 * jax.random.normal(ks[2], (out_ch,)),       # beta
                0.1 * jax.random.normal(ks[3], (out_ch,)),       # running_mean
                0.5 + jax.random.uniform(ks[4], (out_ch,)))      # running_var
    p["w2"] = 0.1 * jax.random.normal(ks[5], (out_ch, out_ch, 3, 3), jnp.float32)
    p["bn2"] = (0.5 + jax.random.uniform(ks[6], (out_ch,)),
                0.1 * jax.random.normal(ks[7], (out_ch,)),
                0.1 * jax.random.normal(ks[8], (out_ch,)),
                0.5 + jax.random.uniform(ks[9], (out_ch,)))
    if stride != 1 or in_ch != out_ch:
        p["ws"] = 0.1 * jax.random.normal(ks[10], (out_ch, in_ch, 1, 1), jnp.float32)
        p["bns"] = (0.5 + jax.random.uniform(ks[11], (out_ch,)),
                    0.1 * jax.random.normal(ks[12], (out_ch,)),
                    0.1 * jax.random.normal(ks[13], (out_ch,)),
                    0.5 + jax.random.uniform(ks[14], (out_ch,)))
    else:
        p["ws"] = None
        p["bns"] = None
    return p


def resblock_forward(params, x_nchw, stride):
    x = jnp.transpose(x_nchw, (0, 2, 3, 1)).astype(jnp.float32)  # NHWC
    n, h, w, c_in = x.shape
    c_out = params["w1"].shape[0]

    # ---- conv3x3(stride) + BN1 + ReLU; bf16 intermediate straight from kernel
    w1 = conv_weight_to_matrix(params["w1"])
    s1, b1 = fold_bn(*params["bn1"])
    p1, ho, wo = im2col_bf16(x, 3, 3, stride, 1)
    hid = fused_conv_matmul(p1, w1 * s1, b1, relu=True,
                            out_dtype=jnp.bfloat16)        # (N*Ho*Wo, Cout)
    hid_nhwc = hid.reshape(n, ho, wo, c_out)

    # ---- conv3x3(1) + BN2, shortcut fused into the same kernel, + ReLU ------
    w2 = conv_weight_to_matrix(params["w2"])
    s2, b2 = fold_bn(*params["bn2"])
    p2, _, _ = im2col_bf16(hid_nhwc, 3, 3, 1, 1)            # (M, 9*Cout) bf16

    if params["ws"] is not None:
        # projection shortcut: 1x1 strided conv + BN as a second in-kernel dot.
        ws = conv_weight_to_matrix(params["ws"])
        ss, bs = fold_bn(*params["bns"])
        ps, _, _ = im2col_bf16(x, 1, 1, stride, 0)          # (M, Cin) bf16
        out = fused_conv_matmul(p2, w2 * s2, b2 + bs,
                                shortcut=(ps, ws * ss), relu=True,
                                out_dtype=jnp.float32)
    else:
        # identity shortcut: f32 residual added in the kernel epilogue.
        res = x.reshape(n * h * w, c_in)
        out = fused_conv_matmul(p2, w2 * s2, b2,
                                residual=res, relu=True,
                                out_dtype=jnp.float32)

    out = out.reshape(n, ho, wo, c_out)
    return jnp.transpose(out, (0, 3, 1, 2))  # back to NCHW


# --------------------------- pure-JAX reference ------------------------------

def _ref_conv(x, w, stride, pad):
    return jax.lax.conv_general_dilated(
        x, w, (stride, stride), ((pad, pad), (pad, pad)),
        dimension_numbers=("NCHW", "OIHW", "NCHW"))


def _ref_bn(x, bn, eps=1e-5):
    gamma, beta, mean, var = (a.reshape(1, -1, 1, 1) for a in bn)
    return gamma * (x - mean) / jnp.sqrt(var + eps) + beta


def resblock_reference(params, x_nchw, stride):
    out = _ref_conv(x_nchw, params["w1"], stride, 1)
    out = jax.nn.relu(_ref_bn(out, params["bn1"]))
    out = _ref_bn(_ref_conv(out, params["w2"], 1, 1), params["bn2"])
    if params["ws"] is not None:
        short = _ref_bn(_ref_conv(x_nchw, params["ws"], stride, 0), params["bns"])
    else:
        short = x_nchw
    return jax.nn.relu(out + short)


# ---------------------------------- main -------------------------------------

if __name__ == "__main__":
    key = jax.random.PRNGKey(0)
    k_x, k_p, k_x2, k_p2 = jax.random.split(key, 4)

    # bf16 MXU inputs with f32 accumulation/epilogue -> loose-but-real tolerance.
    RTOL, ATOL = 2e-2, 2e-2

    # Case 1: projection shortcut (stride 2, channel change).
    in_ch, out_ch, stride = 4, 8, 2
    x = jax.random.normal(k_x, (2, in_ch, 16, 16), jnp.float32)  # NCHW
    params = init_resblock_params(k_p, in_ch, out_ch, stride)
    out = jax.block_until_ready(resblock_forward(params, x, stride))
    ref = jax.block_until_ready(resblock_reference(params, x, stride))
    assert out.shape == ref.shape, (out.shape, ref.shape)
    np.testing.assert_allclose(np.asarray(out), np.asarray(ref),
                               rtol=RTOL, atol=ATOL)

    # Case 2: identity shortcut (stride 1, same channels).
    in_ch2, out_ch2, stride2 = 8, 8, 1
    x2 = jax.random.normal(k_x2, (2, in_ch2, 16, 16), jnp.float32)
    params2 = init_resblock_params(k_p2, in_ch2, out_ch2, stride2)
    out2 = jax.block_until_ready(resblock_forward(params2, x2, stride2))
    ref2 = jax.block_until_ready(resblock_reference(params2, x2, stride2))
    assert out2.shape == ref2.shape, (out2.shape, ref2.shape)
    np.testing.assert_allclose(np.asarray(out2), np.asarray(ref2),
                               rtol=RTOL, atol=ATOL)

    print("KERNEL_OK")
</pallas_src>

<mosaic_0001>
module attributes {stable_mosaic.version = 11 : i64} {
  func.func @_fused_conv_kernel(%arg0: i32, %arg1: memref<64x48xbf16, #tpu.memory_space<vmem>>, %arg2: memref<48x128xbf16, #tpu.memory_space<vmem>>, %arg3: memref<1x128xf32, #tpu.memory_space<vmem>>, %arg4: memref<64x128xbf16, #tpu.memory_space<vmem>>) attributes {dimension_semantics = [#tpu.dimension_semantics<parallel>], iteration_bounds = array<i64: 2>, scalar_prefetch = 0 : i64, scratch_operands = 0 : i64, tpu.core_type = #tpu.core_type<tc>, window_params = [{transform_indices = @transform_0, window_bounds = array<i64: 64, 48>}, {pipeline_mode = #tpu.pipeline_mode<synchronous>, transform_indices = @transform_1, window_bounds = array<i64: 48, 128>}, {pipeline_mode = #tpu.pipeline_mode<synchronous>, transform_indices = @transform_2, window_bounds = array<i64: 1, 128>}, {transform_indices = @transform_3, window_bounds = array<i64: 64, 128>}]} {
    %c0 = arith.constant 0 : index
    %c0_0 = arith.constant 0 : index
    %0 = vector.load %arg1[%c0, %c0_0] : memref<64x48xbf16, #tpu.memory_space<vmem>>, vector<64x48xbf16>
    %c0_1 = arith.constant 0 : index
    %c0_2 = arith.constant 0 : index
    %1 = vector.load %arg2[%c0_1, %c0_2] : memref<48x128xbf16, #tpu.memory_space<vmem>>, vector<48x128xbf16>
    %cst = arith.constant dense<0.000000e+00> : vector<64x128xf32>
    %2 = tpu.matmul %0, %1, %cst {dimension_numbers = #tpu.dot_dimension_numbers<[1], [0], [0], [1], [0, 0, 1, 1], [], []>} : vector<64x48xbf16>, vector<48x128xbf16>, vector<64x128xf32> -> vector<64x128xf32>
    %c0_3 = arith.constant 0 : index
    %c0_4 = arith.constant 0 : index
    %3 = vector.load %arg3[%c0_3, %c0_4] : memref<1x128xf32, #tpu.memory_space<vmem>>, vector<1x128xf32>
    %4 = vector.broadcast %3 : vector<1x128xf32> to vector<64x128xf32>
    %5 = arith.addf %2, %4 : vector<64x128xf32>
    %cst_5 = arith.constant 0.000000e+00 : f32
    %6 = vector.broadcast %cst_5 : f32 to vector<64x128xf32>
    %7 = arith.maximumf %5, %6 : vector<64x128xf32>
    %8 = arith.truncf %7 : vector<64x128xf32> to vector<64x128xbf16>
    %c0_6 = arith.constant 0 : index
    %c0_7 = arith.constant 0 : index
    %9 = vector.load %arg4[%c0_6, %c0_7] : memref<64x128xbf16, #tpu.memory_space<vmem>>, vector<64x128xbf16>
    tpu.vector_store %arg4[%c0_6, %c0_7], %8 {strides = array<i32>} : memref<64x128xbf16, #tpu.memory_space<vmem>>, vector<64x128xbf16>,
    return
  }
  func.func @transform_0(%arg0: i32) -> (i32, i32) {
    %c0_i32 = arith.constant 0 : i32
    %c0_i32_0 = arith.constant 0 : i32
    return %arg0, %c0_i32 : i32, i32
  }
  func.func @transform_1(%arg0: i32) -> (i32, i32) {
    %c0_i32 = arith.constant 0 : i32
    %c0_i32_0 = arith.constant 0 : i32
    %c0_i32_1 = arith.constant 0 : i32
    return %c0_i32, %c0_i32_0 : i32, i32
  }
  func.func @transform_2(%arg0: i32) -> (i32, i32) {
    %c0_i32 = arith.constant 0 : i32
    %c0_i32_0 = arith.constant 0 : i32
    %c0_i32_1 = arith.constant 0 : i32
    return %c0_i32, %c0_i32_0 : i32, i32
  }
  func.func @transform_3(%arg0: i32) -> (i32, i32) {
    %c0_i32 = arith.constant 0 : i32
    %c0_i32_0 = arith.constant 0 : i32
    return %arg0, %c0_i32 : i32, i32
  }
}

</mosaic_0001>

<bundles_post_ra>
// kernel: tpu_custom_call.1
= control target key start
LH: loop header
LB: loop body
LE: loop exit
PB: predicated region body
PF: predicated region fallthrough
CT: control target
= control target key end

     0   :  { %8 = vsyncpa [#allocation3], 0  ;;  %s778_s0 = inlined_call_operand.vmem [shape: bf16[128,48], index: 0, kind: input, shape index: {}]   ;;  %s779_s1 = inlined_call_operand.vmem [shape: bf16[48,128], index: 1, kind: input, shape index: {}]   ;;  %s780_s2 = inlined_call_operand.vmem [shape: f32[1,128], index: 2, kind: input, shape index: {}]   ;;  %s781_s3 = inlined_call_operand.hbm [shape: bf16[128,128], index: 3, kind: output, shape index: {}]  }
   0x1   :  { %10 = vsyncpa [#allocation3 + $0x1], 0  ;;  %s660_s12 = smov 0   ;;  %s662_s13 = smov 0  }
   0x2   :  { %s664_s14 = smov 0   ;;  %s666_s15 = smov 0  }
   0x3 LB: > { %s681_s16 = sadd.s32 4294967295, %s635_s15   ;;  %s434_s17 = sadd.s32 4294967294, %s635_s15   ;;  %s635_s15 = sphi %s666_s15, %s787_s15   ;;  %s631_s14 = sphi %s664_s14, %s786_s14   ;;  %s627_s13 = sphi %s662_s13, %s785_s13   ;;  %s623_s12 = sphi %s660_s12, %s784_s12  }
   0x4   : > { %s685_s18 = sadd.s32 1, %s635_s15   ;;  %s91_s19 = sadd.s32 1, %s631_s14 }
   0x5   : > { %s88_s20 = ssub.s32 %s635_s15, %s685_s18  ;;  %p101_p0 = scmp.ne.s32.totalorder %s631_s14, %s627_s13 }
   0x6   : > { %p89_p1 = scmp.eq.s32.totalorder %s88_s20, 0  ;;  %p102_p2 = scmp.eq.s32.totalorder %s681_s16, 1 }
   0x7   : > { %p107_p3 = scmp.ne.s32.totalorder %s627_s13, %s623_s12  ;;  %p108_p4 = scmp.eq.s32.totalorder %s434_s17, 1 }
   0x8   : > { %s696_s21 = scalar_select %p89_p1, %s631_s14, %s91_s19  }
   0x9   : > { %p698_p5 = por %p102_p2, %p101_p0  ;;  %p702_p6 = por %p108_p4, %p107_p3 }
   0xa   : > { %p437_p7 = scmp.ge.s32.totalorder %s635_s15, 1  ;;  %p141_p8 = scmp.lt.s32.totalorder %s635_s15, 3 }
   0xc   : > { %p142_p9 = pnand %p437_p7, %p141_p8 }
   0xd   : > { %v566_v0 = vld [vmem:[%s779_s1] sm:$0xff] (!%p142_p9)   ;;  %s439_s26 = sshll.u32 (!%p142_p9), %s681_s16, 3  ;;  %v567_v1 = vld [vmem:[%s779_s1 + $0x8] sm:$0xff] (!%p142_p9)   ;;  %v568_v2 = vld [vmem:[%s779_s1 + $0x10] sm:$0xff] (!%p142_p9)   ;;  %vm232_vm0 = vcmask (!%p142_p9), 392192   ;;  %s162_s8 = sand.u32 (!%p142_p9), 1, %s627_s13  }
   0xe   : > { %145 = sbr.rel (%p142_p9) target bundleno = 262 (0x106), region = 32  ;;  %p166_p10 = scmp.lt.s32.totalorder (!%p142_p9), %s439_s26, 15  ;;  %505 = vmatprep.subr.bf16.mxu0 (!%p142_p9), %v566_v0  ;;  %519 = vmatprep.subr.bf16.mxu1 (!%p142_p9), %v566_v0  ;;  %v441_v7 = vld [vmem:[%s780_s2] ss:$0 sm:$0xff] (!%p142_p9) }
   0xf   : > { %506 = vmatpush3.bf16.msra.mxu0 (!%p142_p9), %v566_v0  ;;  %522 = vmatpush3.bf16.msra.mxu1 (!%p142_p9), %v566_v0  ;;  %s438_s11 = sshll.u32 (!%p142_p9), %s162_s8, 5  ;;  %s474_s20 = sshll.u32 (!%p142_p9), %s681_s16, 9 }
  0x10   : > { %507 = vmatprep.subr.bf16.mxu0 (!%p142_p9), %v567_v1  ;;  %520 = vmatprep.subr.bf16.mxu1 (!%p142_p9), %v567_v1  ;;  %s164_s17 = scalar_lea.vmem (!%p142_p9), [#allocation2], %s438_s11  ;;  %s733_s16 = scalar_lea.hbm (!%p142_p9), %s781_s3, %s474_s20 }
  0x11   : > { %s372_s19 = sshll.u32 (!%p142_p9), %s164_s17, 4  ;;  %s637_s28 = smov (!%p142_p9), [#allocation2]   ;;  %s728_s19 = int_to_ptr.vmem [resolvable:$true] %s372_s19 }
  0x12   : > { %s573_s27 = scalar_lea.vmem (!%p142_p9), %s728_s19, 512  ;;  %s577_s29 = sshll.u32 (!%p142_p9), %s637_s28, 4  ;;  %s578_s29 = int_to_ptr.vmem [resolvable:$false] %s577_s29 }
  0x13   : > { %508 = vmatpush3.bf16.msra.mxu0 (!%p142_p9), %v567_v1  ;;  %523 = vmatpush3.bf16.msra.mxu1 (!%p142_p9), %v567_v1  ;;  %p574_p11 = scmp.ne.s32.totalorder (!%p142_p9), %s728_s19, %s573_s27  ;;  %s579_s30 = scalar_lea.vmem (!%p142_p9), %s578_s29, 1024 }
  0x14   : > { %509 = vmatprep.subr.bf16.mxu0 (!%p142_p9), %v568_v2  ;;  %521 = vmatprep.subr.bf16.mxu1 (!%p142_p9), %v568_v2  ;;  %p580_p0 = scmp.lt.s32.totalorder (!%p142_p9), %s728_s19, %s578_s29  ;;  %p581_p1 = scmp.lt.s32.totalorder (!%p142_p9), %s579_s30, %s573_s27 }
  0x15   : > { %s789_s26 = smov (!%p166_p10, %s439_s26), 15  ;;  %p575_p12 = pnand %p574_p11, %p698_p5 }
  0x16   : > { %s440_s4 = sshll.u32 %s789_s26, 2  ;;  %s737_s26 = scalar_lea.sflag [#allocation3], %s162_s8 }
  0x17   : > { %s169_s7 = scalar_lea.vmem %s778_s0, %s440_s4  ;;  %510 = vmatpush3.bf16.msra.mxu0 %v568_v2  ;;  %524 = vmatpush3.bf16.msra.mxu1 %v568_v2  ;;  %p576_p13 = pneg %p575_p12 }
  0x18   : > { %v569_v3 = vld [vmem:[%s169_s7] sm:$0xff]   ;;  %v570_v4 = vld [vmem:[%s169_s7 + $0x10] sm:$0xff]   ;;  %v571_v5 = vld [vmem:[%s169_s7 + $0x8] sm:$0xff]   ;;  %p582_p2 = por %p581_p1, %p580_p0 }
  0x19   : > { %511 = vmatprep.mubr.msk.bf16.mxu0 %vm232_vm0, %v569_v3  ;;  %515 = vmatprep.mubr.msk.bf16.mxu1 %vm232_vm0, %v570_v4  ;;  %v572_v6 = vld [vmem:[%s169_s7 + $0x18] sm:$0xff]  }
  0x1a   : > { %512 = vmatmul.mubr.msk.bf16.vlgmr.msra.gmra.mrb[0].mxu0 %vm232_vm0, %v571_v5  ;;  %516 = vmatmul.mubr.msk.bf16.vlgmr.msra.gmra.mrb[0].mxu1 %vm232_vm0, %v572_v6  ;;  %p583_p3 = pnand %p582_p2, %p576_p13 }
  0xed   : > { %v513_v8 = vpop.f32.mrb[0].mxu0  ;;  %v517_v9 = vpop.f32.mrb[0].mxu1 }
  0xee   : > { %v288_v10 = vadd.f32 %v513_v8, %v441_v7  ;;  %v304_v11 = vadd.f32 %v517_v9, %v441_v7  ;;  %v279_v12 = vpop.f32.mrb[1].mxu0  ;;  %v295_v13 = vpop.f32.mrb[1].mxu1 }
  0xef   : > { %v280_v14 = vadd.f32 %v441_v7, %v279_v12  ;;  %v296_v15 = vadd.f32 %v441_v7, %v295_v13  ;;  %v514_v16 = vpop.f32.mrb[2].mxu0  ;;  %v518_v17 = vpop.f32.mrb[2].mxu1 }
  0xf0   : > { %v291_v18 = vadd.f32 %v514_v16, %v441_v7  ;;  %v307_v19 = vadd.f32 %v518_v17, %v441_v7  ;;  %v282_v20 = vpop.f32.mrb[3].mxu0  ;;  %v298_v21 = vpop.f32.mrb[3].mxu1  ;;  %v312_v24 = vmax.f32 %v288_v10, 0.0  ;;  %v316_v25 = vmax.f32 %v304_v11, 0.0 }
  0xf1   : > { %v283_v22 = vadd.f32 %v441_v7, %v282_v20  ;;  %v299_v23 = vadd.f32 %v441_v7, %v298_v21  ;;  %v310_v28 = vmax.f32 %v280_v14, 0.0  ;;  %v314_v29 = vmax.f32 %v296_v15, 0.0 }
  0xf2   : > { %v313_v26 = vmax.f32 %v291_v18, 0.0  ;;  %v317_v27 = vmax.f32 %v307_v19, 0.0 }
  0xf3   : > { %v311_v30 = vmax.f32 %v283_v22, 0.0  ;;  %v315_v31 = vmax.f32 %v299_v23, 0.0 }
  0xf4   : > { %v483_v32 = vpack.c.bf16 %v313_v26, %v312_v24  ;;  %v493_v33 = vpack.c.bf16 %v317_v27, %v316_v25 }
  0xf5   : > { %v478_v34 = vpack.c.bf16 %v311_v30, %v310_v28  ;;  %v488_v35 = vpack.c.bf16 %v315_v31, %v314_v29 }
  0xf6   : > { %495 = vst [vmem:[%s164_s17 + $0x8] sm:$0xff] %v483_v32   ;;  %497 = vst [vmem:[%s164_s17 + $0x18] sm:$0xff] %v493_v33  }
  0xf7   : > { %479 = vst [vmem:[%s164_s17] sm:$0xff] %v478_v34   ;;  %496 = vst [vmem:[%s164_s17 + $0x10] sm:$0xff] %v488_v35  }
  0xf8   : > { %586 = shalt.err (!%p583_p3)
}
  0xf9   : > { %s587_s4 = scalar_lea.hbm %s733_s16, 512  ;;  %s591_s7 = scalar_lea.hbm %s781_s3, 1024 }
  0xfa   : > { %p588_p4 = scmp.ne.s32.totalorder %s733_s16, %s587_s4  ;;  %p592_p9 = scmp.lt.u32.totalorder %s733_s16, %s781_s3 }
  0xfb   : > { %p593_p10 = scmp.lt.u32.totalorder %s591_s7, %s587_s4  ;;  %p595_p12 = scmp.lt.u32.totalorder %s587_s4, %s733_s16 }
  0xfc   : > { %p589_p7 = pnand %p588_p4, %p698_p5 }
  0xfd   : > { %p594_p11 = por %p593_p10, %p592_p9 }
  0xfe   : > { %p590_p8 = pneg %p589_p7 }
  0xff   : > { %p596_p13 = por %p595_p12, %p594_p11 }
 0x101   : > { %p597_p0 = pnand %p596_p13, %p590_p8 }
 0x103   : > { %600 = shalt.err (!%p597_p0)
}
 0x104   : > { %s638_s10 = smov 64   ;;  %s639_s11 = smov 4  }
 0x105   : > { %525 = dma.vmem_to_hbm [thread:$0]  (%p698_p5), %s728_s19, 512, %s733_s16, %s737_s26, %s638_s10, %s638_s10, %s639_s11  }
 0x106 PF: > { %p531_p1 = scmp.ge.s32.totalorder %s635_s15, 2  ;;  %s387_s17 = sand.u32 1, %s623_s12  }
 0x107   : > { %s388_s20 = scalar_lea.sflag [#allocation3], %s387_s17 }
 0x108   : > { %p528_p2 = pnand %p531_p1, %p702_p6 }
 0x10a   : > { %618 = dma.done.wait (!%p528_p2), %s388_s20, 512  }
 0x10b   : > { %620 = vsyncadd (!%p528_p2), %s388_s20, 4294966784  ;;  %p13_p3 = scmp.ge.s32.totalorder %s685_s18, 4   ;;  %s784_s12 = smov %s627_s13 }
 0x10c   : > { %s785_s13 = smov %s631_s14  ;;  %s786_s14 = smov %s696_s21 }
 0x10d   : > { %s787_s15 = smov %s685_s18  ;;  %15 = sbr.rel (!%p13_p3) target bundleno = 3 (0x3), region = 67 }
 0x114   :  { %393 = vsyncpa [#allocation3], 1 }
 0x115   :  { %395 = vsyncpa [#allocation3 + $0x1], 1 }

</bundles_post_ra>
